<compile_context>
chip_gen: v6e
topology: v6e:2x2x1
jax: 0.10.0
libtpu: 0.0.40
codegen_flags: <defaults>
</compile_context>

<pallas_src>
import jax
import jax.numpy as jnp
from jax.experimental import pallas as pl
from jax.experimental.pallas import tpu as pltpu


def _outconv_kernel(x_ref, w_ref, b_ref, o_ref):
    # x_ref: (bn, C_in, thw)  -- channels on sublanes, spatial on lanes
    # w_ref: (C_out, C_in), b_ref: (C_out, 1)
    # o_ref: (bn, C_out, thw)
    acc = jnp.einsum(
        "oc,bct->bot", w_ref[...], x_ref[...],
        preferred_element_type=jnp.float32,
    )
    o_ref[...] = jnp.tanh(acc + b_ref[...][None]).astype(o_ref.dtype)


def outconv_pallas(x_nchw, weight, bias, *, target_step_bytes=2 << 20):
    """tanh(1x1 conv(x)).

    x_nchw : (N, C_in, H, W)
    weight : (C_out, C_in)   -- PyTorch Conv2d weight (C_out, C_in, 1, 1) squeezed
    bias   : (C_out,)
    returns: (N, C_out, H, W)
    """
    N, C_in, H, W = x_nchw.shape
    C_out = weight.shape[0]
    HW = H * W
    elem_bytes = 4  # f32

    # Contiguous flatten of (H, W) -> HW: no data movement, no transpose.
    x = x_nchw.reshape(N, C_in, HW)
    bias_2d = bias.reshape(C_out, 1)

    # ---- Tile sizing: target ~target_step_bytes of combined in+out DMA per step ----
    bytes_per_lane = elem_bytes * (C_in + C_out)
    HW_ceil = pl.cdiv(HW, 128) * 128          # lane-aligned spatial extent
    thw = max(128, (target_step_bytes // bytes_per_lane) // 128 * 128)
    thw = min(thw, HW_ceil)                   # a tile never needs to exceed HW

    # If the whole spatial extent fits in a single tile, amortize per-step overhead
    # by batching images per grid step.
    if thw >= HW_ceil and N > 1:
        bn = max(1, min(N, int(target_step_bytes // max(1, bytes_per_lane * HW_ceil))))
    else:
        bn = 1

    grid = (pl.cdiv(N, bn), pl.cdiv(HW, thw))

    # ---- VMEM budget: double-buffered in+out tiles + f32 acc + resident W/b ----
    step_io_bytes = elem_bytes * bn * thw * (C_in + C_out)
    acc_bytes = 4 * bn * C_out * thw
    resident_bytes = elem_bytes * (C_out * C_in + C_out)
    vmem_needed = 2 * step_io_bytes + acc_bytes + resident_bytes
    vmem_limit = int(min(max(2 * vmem_needed, 16 << 20), 40 << 20))

    cost = pl.CostEstimate(
        flops=2 * N * C_out * C_in * HW,
        transcendentals=N * C_out * HW,
        bytes_accessed=elem_bytes * (N * (C_in + C_out) * HW + C_out * C_in + C_out),
    )

    out = pl.pallas_call(
        _outconv_kernel,
        out_shape=jax.ShapeDtypeStruct((N, C_out, HW), x_nchw.dtype),
        grid_spec=pltpu.PrefetchScalarGridSpec(
            num_scalar_prefetch=0,
            grid=grid,
            in_specs=[
                # Streaming activations: (bn, C_in, thw) tile, spatial on lanes.
                # Ragged last blocks (batch and spatial) are handled by Pallas:
                # padded on read, masked on writeback.
                pl.BlockSpec((bn, C_in, thw), lambda n, i: (n, 0, i)),
                # Weight / bias: constant index map -> resident across the grid.
                pl.BlockSpec((C_out, C_in), lambda n, i: (0, 0)),
                pl.BlockSpec((C_out, 1), lambda n, i: (0, 0)),
            ],
            out_specs=pl.BlockSpec((bn, C_out, thw), lambda n, i: (n, 0, i)),
        ),
        compiler_params=pltpu.CompilerParams(
            dimension_semantics=("parallel", "parallel"),
            vmem_limit_bytes=vmem_limit,
        ),
        cost_estimate=cost,
    )(x, weight, bias_2d)

    return out.reshape(N, C_out, H, W)


if __name__ == "__main__":
    key = jax.random.PRNGKey(0)
    kx, kw, kb = jax.random.split(key, 3)

    batch, in_channels, out_channels, spatial = 2, 4, 3, 16

    x = jax.random.normal(kx, (batch, in_channels, spatial, spatial), jnp.float32)
    # PyTorch Conv2d(k=1) weight is (C_out, C_in, 1, 1); we keep its (C_out, C_in) view.
    bound = 1.0 / (in_channels ** 0.5)
    weight = jax.random.uniform(kw, (out_channels, in_channels), jnp.float32,
                                minval=-bound, maxval=bound)
    bias = jax.random.uniform(kb, (out_channels,), jnp.float32,
                              minval=-bound, maxval=bound)

    out = outconv_pallas(x, weight, bias)
    out = jax.block_until_ready(out)

    # Reference check (plain JAX): tanh(1x1 conv)
    ref = jnp.tanh(
        jnp.einsum("nchw,oc->nohw", x, weight) + bias[None, :, None, None]
    )
    assert out.shape == (batch, out_channels, spatial, spatial)
    assert jnp.allclose(out, ref, atol=1e-5, rtol=1e-5)

    print("KERNEL_OK")
</pallas_src>

<mosaic_0001>
module attributes {stable_mosaic.version = 11 : i64} {
  func.func @_outconv_kernel(%arg0: i32, %arg1: i32, %arg2: memref<2x4x256xf32, #tpu.memory_space<vmem>>, %arg3: memref<3x4xf32, #tpu.memory_space<vmem>>, %arg4: memref<3x1xf32, #tpu.memory_space<vmem>>, %arg5: memref<2x3x256xf32, #tpu.memory_space<vmem>>) attributes {dimension_semantics = [#tpu.dimension_semantics<parallel>, #tpu.dimension_semantics<parallel>], iteration_bounds = array<i64: 1, 1>, scalar_prefetch = 0 : i64, scratch_operands = 0 : i64, tpu.core_type = #tpu.core_type<tc>, window_params = [{transform_indices = @transform_0, window_bounds = array<i64: 2, 4, 256>}, {pipeline_mode = #tpu.pipeline_mode<synchronous>, transform_indices = @transform_1, window_bounds = array<i64: 3, 4>}, {pipeline_mode = #tpu.pipeline_mode<synchronous>, transform_indices = @transform_2, window_bounds = array<i64: 3, 1>}, {transform_indices = @transform_3, window_bounds = array<i64: 2, 3, 256>}]} {
    %c0 = arith.constant 0 : index
    %c0_0 = arith.constant 0 : index
    %0 = vector.load %arg3[%c0, %c0_0] : memref<3x4xf32, #tpu.memory_space<vmem>>, vector<3x4xf32>
    %c0_1 = arith.constant 0 : index
    %c0_2 = arith.constant 0 : index
    %c0_3 = arith.constant 0 : index
    %1 = vector.load %arg2[%c0_1, %c0_2, %c0_3] : memref<2x4x256xf32, #tpu.memory_space<vmem>>, vector<2x4x256xf32>
    "tpu.trace_start"() <{level = 10 : i32, message = "oc,bct->bot"}> : () -> ()
    %cst = arith.constant dense<0.000000e+00> : vector<2x256x3xf32>
    %2 = tpu.matmul %1, %0, %cst {dimension_numbers = #tpu.dot_dimension_numbers<[1], [1], [0, 2], [0], [0, 0, 0, 2, 1, 0], [], []>} : vector<2x4x256xf32>, vector<3x4xf32>, vector<2x256x3xf32> -> vector<2x256x3xf32>
    %3 = tpu.transpose %2, [0, 2, 1] : vector<2x256x3xf32> -> vector<2x3x256xf32>
    "tpu.trace_stop"() : () -> ()
    %c0_4 = arith.constant 0 : index
    %c0_5 = arith.constant 0 : index
    %4 = vector.load %arg4[%c0_4, %c0_5] : memref<3x1xf32, #tpu.memory_space<vmem>>, vector<3x1xf32>
    %5 = vector.shape_cast %4 : vector<3x1xf32> to vector<1x3x1xf32>
    %6 = vector.broadcast %5 : vector<1x3x1xf32> to vector<2x3x256xf32>
    %7 = arith.addf %3, %6 : vector<2x3x256xf32>
    %8 = math.tanh %7 : vector<2x3x256xf32>
    %c0_6 = arith.constant 0 : index
    %c0_7 = arith.constant 0 : index
    %c0_8 = arith.constant 0 : index
    %9 = vector.load %arg5[%c0_6, %c0_7, %c0_8] : memref<2x3x256xf32, #tpu.memory_space<vmem>>, vector<2x3x256xf32>
    tpu.vector_store %arg5[%c0_6, %c0_7, %c0_8], %8 {strides = array<i32>} : memref<2x3x256xf32, #tpu.memory_space<vmem>>, vector<2x3x256xf32>,
    return
  }
  func.func @transform_0(%arg0: i32, %arg1: i32) -> (i32, i32, i32) {
    %c0_i32 = arith.constant 0 : i32
    %c0_i32_0 = arith.constant 0 : i32
    return %arg0, %c0_i32, %arg1 : i32, i32, i32
  }
  func.func @transform_1(%arg0: i32, %arg1: i32) -> (i32, i32) {
    %c0_i32 = arith.constant 0 : i32
    %c0_i32_0 = arith.constant 0 : i32
    %c0_i32_1 = arith.constant 0 : i32
    return %c0_i32, %c0_i32_0 : i32, i32
  }
  func.func @transform_2(%arg0: i32, %arg1: i32) -> (i32, i32) {
    %c0_i32 = arith.constant 0 : i32
    %c0_i32_0 = arith.constant 0 : i32
    %c0_i32_1 = arith.constant 0 : i32
    return %c0_i32, %c0_i32_0 : i32, i32
  }
  func.func @transform_3(%arg0: i32, %arg1: i32) -> (i32, i32, i32) {
    %c0_i32 = arith.constant 0 : i32
    %c0_i32_0 = arith.constant 0 : i32
    return %arg0, %c0_i32, %arg1 : i32, i32, i32
  }
}

</mosaic_0001>

<bundles_post_ra>
// kernel: tpu_custom_call.1
= control target key start
LH: loop header
LB: loop body
LE: loop exit
PB: predicated region body
PF: predicated region fallthrough
CT: control target
= control target key end

     0   :  { %8 = vsyncpa [#allocation3], 0  ;;  %s1172_s12 = smov [#allocation2]   ;;  %s1281_s0 = inlined_call_operand.hbm [shape: f32[2,4,256], index: 0, kind: input, shape index: {}]   ;;  %s1282_s1 = inlined_call_operand.vmem [shape: f32[3,4], index: 1, kind: input, shape index: {}]   ;;  %s1283_s2 = inlined_call_operand.vmem [shape: f32[3,1], index: 2, kind: input, shape index: {}]   ;;  %s1284_s3 = inlined_call_operand.vmem [shape: f32[2,3,256], index: 3, kind: output, shape index: {}]  }
   0x1   :  { %s14_s13 = sshll.u32 %s1172_s12, 4  ;;  %s15_s13 = int_to_ptr.vmem [resolvable:$true] %s14_s13 }
   0x2   :  { %s1158_s14 = scalar_lea.vmem %s15_s13, 256  ;;  %p1163_p1 = scmp.lt.s32.totalorder %s15_s13, %s15_s13 }
   0x3   :  { %p1159_p0 = scmp.ne.s32.totalorder %s15_s13, %s1158_s14  ;;  %p1164_p2 = scmp.lt.s32.totalorder %s1158_s14, %s1158_s14 }
   0x5   :  { %p1165_p3 = por %p1164_p2, %p1163_p1 }
   0x7   :  { %p1166_p4 = pnand %p1165_p3, %p1159_p0 }
   0x9   :  { %1169 = shalt.err (!%p1166_p4)
}
   0xa   :  { %s1173_s15 = smov 128   ;;  %s1174_s16 = smov 8  }
   0xb   :  { %20 = dma.hbm_to_vmem [thread:$0]  %s1281_s0, 256, %s15_s13, [#allocation3], %s1173_s15, %s1173_s15, %s1174_s16  }
   0xc   :  { %1170 = dma.done.wait [#allocation3], 256  }
   0xd   :  { %1171 = vsyncadd [#allocation3], 4294967040  ;;  %vm165_vm0 = vcmask 31744   ;;  %v29_v0 = vld [vmem:[#allocation2] sm:$0xff]  ;;  %v30_v3 = vld [vmem:[#allocation2 + $0x8] sm:$0xff]  ;;  %v1175_v50 = vmov 0  }
   0xe   :  { %v28_v1 = vld [vmem:[%s1282_s1] sm:$0x7]  ;;  %37 = vxpose.xlu0.b32.start.end [1/1] (short) %v29_v0, 128  ;;  %v33_v2 = vcombine.high %v29_v0, %v29_v0  ;;  %v34_v4 = vcombine.high %v30_v3, %v30_v3 }
   0xf   :  { %1033 = vmatprep.subr.msk.mxu0 %vm165_vm0, %v28_v1  ;;  %1131 = vmatprep.subr.msk.mxu1 %vm165_vm0, %v28_v1  ;;  %v874_v49 = vld [vmem:[%s1283_s2] sm:$0x7] }
  0x10   :  { %1034 = vmatpush3.xpose.msk.msra.mxu0 %vm165_vm0, %v28_v1  ;;  %69 = vxpose.xlu1.b32.start.end [1/1] (short) %v33_v2, 128 }
  0x11   :  { %1132 = vmatpush3.xpose.msk.msra.mxu1 %vm165_vm0, %v28_v1 }
  0x4b   :  { %101 = vxpose.xlu0.b32.start.end [1/1] (short) %v30_v3, 128 }
  0x4d   :  { %133 = vxpose.xlu1.b32.start.end [1/1] (short) %v34_v4, 128 }
  0x6b   :  { %1138 = vset.pattern.permute.xlu1 %v1175_v50 }
  0x8a   :  { %v53_v5 = vpop.trf.xlu0 }
  0x8b   :  { %1035 = vmatprep.mubr.msk.f32.mxu0 %vm165_vm0, %v53_v5 }
  0x8c   :  { %v85_v6 = vpop.trf.xlu1 }
  0x8e   :  { %v54_v7 = vpop.trf.xlu0 }
  0x8f   :  { %1036 = vmatmul.mubr.msk.f32.vlgmr.msra.gmra.mxu0 %vm165_vm0, %v54_v7 }
  0x90   :  { %v86_v8 = vpop.trf.xlu1 }
  0x92   :  { %v55_v9 = vpop.trf.xlu0 }
  0x93   :  { %1038 = vmatprep.mubr.msk.f32.mxu0 %vm165_vm0, %v55_v9 }
  0x94   :  { %v87_v10 = vpop.trf.xlu1 }
  0x96   :  { %v56_v11 = vpop.trf.xlu0 }
  0x97   :  { %1039 = vmatmul.mubr.msk.f32.gmra.mxu0 %vm165_vm0, %v56_v11 }
  0x98   :  { %v88_v12 = vpop.trf.xlu1 }
  0x9a   :  { %v57_v13 = vpop.trf.xlu0 }
  0x9b   :  { %1041 = vmatprep.mubr.msk.f32.mxu0 %vm165_vm0, %v57_v13 }
  0x9c   :  { %v89_v14 = vpop.trf.xlu1 }
  0x9e   :  { %v58_v15 = vpop.trf.xlu0 }
  0x9f   :  { %1042 = vmatmul.mubr.msk.f32.gmra.mxu0 %vm165_vm0, %v58_v15 }
  0xa0   :  { %v90_v16 = vpop.trf.xlu1 }
  0xa2   :  { %v59_v17 = vpop.trf.xlu0 }
  0xa3   :  { %1044 = vmatprep.mubr.msk.f32.mxu0 %vm165_vm0, %v59_v17 }
  0xa4   :  { %v91_v18 = vpop.trf.xlu1 }
  0xa6   :  { %v60_v19 = vpop.trf.xlu0 }
  0xa7   :  { %1045 = vmatmul.mubr.msk.f32.gmra.mxu0 %vm165_vm0, %v60_v19  ;;  %877 = vperm.xlu1 %1138, %v874_v49  }
  0xa8   :  { %v92_v20 = vpop.trf.xlu1 }
  0xaa   :  { %v61_v21 = vpop.trf.xlu0 }
  0xab   :  { %1047 = vmatprep.mubr.msk.f32.mxu0 %vm165_vm0, %v61_v21 }
  0xac   :  { %v93_v22 = vpop.trf.xlu1 }
  0xae   :  { %v62_v23 = vpop.trf.xlu0 }
  0xaf   :  { %1048 = vmatmul.mubr.msk.f32.gmra.mxu0 %vm165_vm0, %v62_v23 }
  0xb0   :  { %v94_v24 = vpop.trf.xlu1 }
  0xb2   :  { %v63_v25 = vpop.trf.xlu0 }
  0xb3   :  { %1050 = vmatprep.mubr.msk.f32.mxu0 %vm165_vm0, %v63_v25 }
  0xb4   :  { %v95_v26 = vpop.trf.xlu1 }
  0xb6   :  { %v64_v27 = vpop.trf.xlu0 }
  0xb7   :  { %1051 = vmatmul.mubr.msk.f32.gmra.mxu0 %vm165_vm0, %v64_v27 }
  0xb8   :  { %v96_v28 = vpop.trf.xlu1 }
  0xba   :  { %v65_v29 = vpop.trf.xlu0 }
  0xbb   :  { %1053 = vmatprep.mubr.msk.f32.mxu0 %vm165_vm0, %v65_v29 }
  0xbc   :  { %v97_v30 = vpop.trf.xlu1 }
  0xbe   :  { %v66_v31 = vpop.trf.xlu0 }
  0xbf   :  { %1054 = vmatmul.mubr.msk.f32.gmra.mxu0 %vm165_vm0, %v66_v31 }
  0xc0   :  { %v98_v32 = vpop.trf.xlu1 }
  0xc2   :  { %v67_v33 = vpop.trf.xlu0 }
  0xc3   :  { %1056 = vmatprep.mubr.msk.f32.mxu0 %vm165_vm0, %v67_v33 }
  0xc4   :  { %v99_v34 = vpop.trf.xlu1 }
  0xc6   :  { %v68_v35 = vpop.trf.xlu0 }
  0xc7   :  { %1057 = vmatmul.mubr.msk.f32.gmra.mxu0 %vm165_vm0, %v68_v35 }
  0xc8   :  { %1059 = vmatprep.mubr.msk.f32.mxu0 %vm165_vm0, %v85_v6  ;;  %v100_v36 = vpop.trf.xlu1 }
  0xca   :  { %v117_v37 = vpop.trf.xlu0 }
  0xcb   :  { %1060 = vmatmul.mubr.msk.f32.gmra.mxu0 %vm165_vm0, %v86_v8  ;;  %1083 = vmatprep.mubr.msk.f32.mxu1 %vm165_vm0, %v117_v37 }
  0xcc   :  { %1062 = vmatprep.mubr.msk.f32.mxu0 %vm165_vm0, %v87_v10  ;;  %v149_v38 = vpop.trf.xlu1 }
  0xce   :  { %v118_v39 = vpop.trf.xlu0 }
  0xcf   :  { %1084 = vmatmul.mubr.msk.f32.vlgmr.msra.gmra.mxu1 %vm165_vm0, %v118_v39  ;;  %1063 = vmatmul.mubr.msk.f32.gmra.mxu0 %vm165_vm0, %v88_v12 }
  0xd0   :  { %1065 = vmatprep.mubr.msk.f32.mxu0 %vm165_vm0, %v89_v14  ;;  %v150_v40 = vpop.trf.xlu1 }
  0xd2   :  { %v119_v41 = vpop.trf.xlu0 }
  0xd3   :  { %1086 = vmatprep.mubr.msk.f32.mxu1 %vm165_vm0, %v119_v41  ;;  %1066 = vmatmul.mubr.msk.f32.gmra.mxu0 %vm165_vm0, %v90_v16 }
  0xd4   :  { %1068 = vmatprep.mubr.msk.f32.mxu0 %vm165_vm0, %v91_v18  ;;  %v151_v43 = vpop.trf.xlu1 }
  0xd6   :  { %v120_v42 = vpop.trf.xlu0 }
  0xd7   :  { %1087 = vmatmul.mubr.msk.f32.gmra.mxu1 %vm165_vm0, %v120_v42  ;;  %1069 = vmatmul.mubr.msk.f32.gmra.mxu0 %vm165_vm0, %v92_v20 }
  0xd8   :  { %1071 = vmatprep.mubr.msk.f32.mxu0 %vm165_vm0, %v93_v22  ;;  %v152_v45 = vpop.trf.xlu1 }
  0xda   :  { %v121_v44 = vpop.trf.xlu0 }
  0xdb   :  { %1089 = vmatprep.mubr.msk.f32.mxu1 %vm165_vm0, %v121_v44  ;;  %1072 = vmatmul.mubr.msk.f32.gmra.mxu0 %vm165_vm0, %v94_v24 }
  0xdc   :  { %1074 = vmatprep.mubr.msk.f32.mxu0 %vm165_vm0, %v95_v26  ;;  %v153_v48 = vpop.trf.xlu1 }
  0xde   :  { %v122_v46 = vpop.trf.xlu0 }
  0xdf   :  { %1090 = vmatmul.mubr.msk.f32.gmra.mxu1 %vm165_vm0, %v122_v46  ;;  %1075 = vmatmul.mubr.msk.f32.gmra.mxu0 %vm165_vm0, %v96_v28 }
  0xe0   :  { %1077 = vmatprep.mubr.msk.f32.mxu0 %vm165_vm0, %v97_v30  ;;  %v154_v52 = vpop.trf.xlu1 }
  0xe2   :  { %v123_v47 = vpop.trf.xlu0 }
  0xe3   :  { %1092 = vmatprep.mubr.msk.f32.mxu1 %vm165_vm0, %v123_v47  ;;  %1078 = vmatmul.mubr.msk.f32.gmra.mxu0 %vm165_vm0, %v98_v32 }
  0xe4   :  { %1080 = vmatprep.mubr.msk.f32.mxu0 %vm165_vm0, %v99_v34  ;;  %v155_v55 = vpop.trf.xlu1 }
  0xe6   :  { %v124_v51 = vpop.trf.xlu0 }
  0xe7   :  { %1093 = vmatmul.mubr.msk.f32.gmra.mxu1 %vm165_vm0, %v124_v51  ;;  %1081 = vmatmul.mubr.msk.f32.gmra.mxu0 %vm165_vm0, %v100_v36 }
  0xe8   :  { %v156_v57 = vpop.trf.xlu1 }
  0xea   :  { %v125_v53 = vpop.trf.xlu0 }
  0xeb   :  { %1095 = vmatprep.mubr.msk.f32.mxu1 %vm165_vm0, %v125_v53 }
  0xec   :  { %v157_v60 = vpop.trf.xlu1 }
  0xee   :  { %v126_v54 = vpop.trf.xlu0 }
  0xef   :  { %1096 = vmatmul.mubr.msk.f32.gmra.mxu1 %vm165_vm0, %v126_v54 }
  0xf0   :  { %v158_v62 = vpop.trf.xlu1 }
  0xf2   :  { %v127_v56 = vpop.trf.xlu0 }
  0xf3   :  { %1098 = vmatprep.mubr.msk.f32.mxu1 %vm165_vm0, %v127_v56 }
  0xf4   :  { %v159_v1 = vpop.trf.xlu1 }
  0xf6   :  { %v128_v58 = vpop.trf.xlu0 }
  0xf7   :  { %1099 = vmatmul.mubr.msk.f32.gmra.mxu1 %vm165_vm0, %v128_v58 }
  0xf8   :  { %v160_v2 = vpop.trf.xlu1 }
  0xfa   :  { %v129_v59 = vpop.trf.xlu0 }
  0xfb   :  { %1101 = vmatprep.mubr.msk.f32.mxu1 %vm165_vm0, %v129_v59 }
  0xfc   :  { %v161_v3 = vpop.trf.xlu1 }
  0xfe   :  { %v130_v61 = vpop.trf.xlu0 }
  0xff   :  { %1102 = vmatmul.mubr.msk.f32.gmra.mxu1 %vm165_vm0, %v130_v61 }
 0x100   :  { %v162_v4 = vpop.trf.xlu1 }
 0x102   :  { %v131_v63 = vpop.trf.xlu0 }
 0x103   :  { %1104 = vmatprep.mubr.msk.f32.mxu1 %vm165_vm0, %v131_v63 }
 0x104   :  { %v163_v5 = vpop.trf.xlu1 }
 0x106   :  { %v132_v0 = vpop.trf.xlu0 }
 0x107   :  { %1105 = vmatmul.mubr.msk.f32.gmra.mxu1 %vm165_vm0, %v132_v0 }
 0x108   :  { %1107 = vmatprep.mubr.msk.f32.mxu1 %vm165_vm0, %v149_v38  ;;  %v164_v6 = vpop.trf.xlu1 }
 0x10b   :  { %1108 = vmatmul.mubr.msk.f32.gmra.mxu1 %vm165_vm0, %v150_v40 }
 0x10c   :  { %1110 = vmatprep.mubr.msk.f32.mxu1 %vm165_vm0, %v151_v43 }
 0x10f   :  { %1111 = vmatmul.mubr.msk.f32.gmra.mxu1 %vm165_vm0, %v152_v45 }
 0x110   :  { %1113 = vmatprep.mubr.msk.f32.mxu1 %vm165_vm0, %v153_v48 }
 0x113   :  { %1114 = vmatmul.mubr.msk.f32.gmra.mxu1 %vm165_vm0, %v154_v52 }
 0x114   :  { %1116 = vmatprep.mubr.msk.f32.mxu1 %vm165_vm0, %v155_v55 }
 0x117   :  { %1117 = vmatmul.mubr.msk.f32.gmra.mxu1 %vm165_vm0, %v156_v57 }
 0x118   :  { %1119 = vmatprep.mubr.msk.f32.mxu1 %vm165_vm0, %v157_v60 }
 0x11b   :  { %1120 = vmatmul.mubr.msk.f32.gmra.mxu1 %vm165_vm0, %v158_v62 }
 0x11c   :  { %1122 = vmatprep.mubr.msk.f32.mxu1 %vm165_vm0, %v159_v1 }
 0x11f   :  { %1123 = vmatmul.mubr.msk.f32.gmra.mxu1 %vm165_vm0, %v160_v2 }
 0x120   :  { %1125 = vmatprep.mubr.msk.f32.mxu1 %vm165_vm0, %v161_v3 }
 0x123   :  { %1126 = vmatmul.mubr.msk.f32.gmra.mxu1 %vm165_vm0, %v162_v4 }
 0x124   :  { %1128 = vmatprep.mubr.msk.f32.mxu1 %vm165_vm0, %v163_v5 }
 0x127   :  { %1129 = vmatmul.mubr.msk.f32.gmra.mxu1 %vm165_vm0, %v164_v6 }
 0x14f   :  { %v1037_v7 = vpop.f32.mrf.mxu0 }
 0x151   :  { %v427_v8 = vpop.f32.mrf.mxu0 }
 0x152   :  { %746 = vxpose.xlu0.b32.start [1/16] (narrow) %v427_v8, 8 }
 0x156   :  { %747 = vxpose.xlu0.b32.cont [2/16] (narrow) %v1037_v7, 8  ;;  %v878_v7 = vpop.permute.xlu1 %877 }
 0x157   :  { %v1040_v9 = vpop.f32.mrf.mxu0 }
 0x159   :  { %v437_v10 = vpop.f32.mrf.mxu0 }
 0x15a   :  { %748 = vxpose.xlu0.b32.cont [3/16] (narrow) %v437_v10, 8 }
 0x15e   :  { %749 = vxpose.xlu0.b32.cont [4/16] (narrow) %v1040_v9, 8 }
 0x15f   :  { %v1043_v11 = vpop.f32.mrf.mxu0 }
 0x161   :  { %v447_v12 = vpop.f32.mrf.mxu0 }
 0x162   :  { %750 = vxpose.xlu0.b32.cont [5/16] (narrow) %v447_v12, 8 }
 0x166   :  { %751 = vxpose.xlu0.b32.cont [6/16] (narrow) %v1043_v11, 8 }
 0x167   :  { %v1046_v13 = vpop.f32.mrf.mxu0 }
 0x169   :  { %v457_v14 = vpop.f32.mrf.mxu0 }
 0x16a   :  { %752 = vxpose.xlu0.b32.cont [7/16] (narrow) %v457_v14, 8 }
 0x16e   :  { %753 = vxpose.xlu0.b32.cont [8/16] (narrow) %v1046_v13, 8 }
 0x16f   :  { %v1049_v15 = vpop.f32.mrf.mxu0 }
 0x171   :  { %v467_v16 = vpop.f32.mrf.mxu0 }
 0x172   :  { %754 = vxpose.xlu0.b32.cont [9/16] (narrow) %v467_v16, 8 }
 0x176   :  { %755 = vxpose.xlu0.b32.cont [10/16] (narrow) %v1049_v15, 8 }
 0x177   :  { %v1052_v17 = vpop.f32.mrf.mxu0 }
 0x179   :  { %v477_v18 = vpop.f32.mrf.mxu0 }
 0x17a   :  { %756 = vxpose.xlu0.b32.cont [11/16] (narrow) %v477_v18, 8 }
 0x17e   :  { %757 = vxpose.xlu0.b32.cont [12/16] (narrow) %v1052_v17, 8 }
 0x17f   :  { %v1055_v19 = vpop.f32.mrf.mxu0 }
 0x181   :  { %v487_v20 = vpop.f32.mrf.mxu0 }
 0x182   :  { %758 = vxpose.xlu0.b32.cont [13/16] (narrow) %v487_v20, 8 }
 0x186   :  { %759 = vxpose.xlu0.b32.cont [14/16] (narrow) %v1055_v19, 8 }
 0x187   :  { %v1058_v21 = vpop.f32.mrf.mxu0 }
 0x189   :  { %v497_v22 = vpop.f32.mrf.mxu0 }
 0x18a   :  { %760 = vxpose.xlu0.b32.cont [15/16] (narrow) %v497_v22, 8 }
 0x18b   :  { %v1061_v23 = vpop.f32.mrf.mxu0 }
 0x18d   :  { %v507_v24 = vpop.f32.mrf.mxu0 }
 0x18e   :  { %761 = vxpose.xlu0.b32.end [16/16] (narrow) %v1058_v21, 8  ;;  %778 = vxpose.xlu1.b32.start [1/16] (narrow) %v507_v24, 8 }
 0x18f   :  { %v1085_v25 = vpop.f32.mrf.mxu1  ;;  %v1064_v26 = vpop.f32.mrf.mxu0 }
 0x191   :  { %v587_v27 = vpop.f32.mrf.mxu1  ;;  %v517_v28 = vpop.f32.mrf.mxu0 }
 0x192   :  { %810 = vxpose.xlu0.b32.start [1/16] (narrow) %v587_v27, 8  ;;  %779 = vxpose.xlu1.b32.cont [2/16] (narrow) %v1061_v23, 8 }
 0x193   :  { %v1067_v30 = vpop.f32.mrf.mxu0 }
 0x195   :  { %v527_v32 = vpop.f32.mrf.mxu0 }
 0x196   :  { %811 = vxpose.xlu0.b32.cont [2/16] (narrow) %v1085_v25, 8  ;;  %780 = vxpose.xlu1.b32.cont [3/16] (narrow) %v517_v28, 8 }
 0x197   :  { %v1088_v29 = vpop.f32.mrf.mxu1  ;;  %v1070_v34 = vpop.f32.mrf.mxu0 }
 0x199   :  { %v597_v31 = vpop.f32.mrf.mxu1  ;;  %v537_v36 = vpop.f32.mrf.mxu0 }
 0x19a   :  { %812 = vxpose.xlu0.b32.cont [3/16] (narrow) %v597_v31, 8  ;;  %781 = vxpose.xlu1.b32.cont [4/16] (narrow) %v1064_v26, 8 }
 0x19b   :  { %v1073_v38 = vpop.f32.mrf.mxu0 }
 0x19d   :  { %v547_v40 = vpop.f32.mrf.mxu0 }
 0x19e   :  { %813 = vxpose.xlu0.b32.cont [4/16] (narrow) %v1088_v29, 8  ;;  %782 = vxpose.xlu1.b32.cont [5/16] (narrow) %v527_v32, 8 }
 0x19f   :  { %v1091_v33 = vpop.f32.mrf.mxu1  ;;  %v1076_v42 = vpop.f32.mrf.mxu0 }
 0x1a1   :  { %v607_v35 = vpop.f32.mrf.mxu1  ;;  %v557_v44 = vpop.f32.mrf.mxu0 }
 0x1a2   :  { %814 = vxpose.xlu0.b32.cont [5/16] (narrow) %v607_v35, 8  ;;  %783 = vxpose.xlu1.b32.cont [6/16] (narrow) %v1067_v30, 8 }
 0x1a3   :  { %v1079_v46 = vpop.f32.mrf.mxu0 }
 0x1a5   :  { %v567_v48 = vpop.f32.mrf.mxu0 }
 0x1a6   :  { %815 = vxpose.xlu0.b32.cont [6/16] (narrow) %v1091_v33, 8  ;;  %784 = vxpose.xlu1.b32.cont [7/16] (narrow) %v537_v36, 8 }
 0x1a7   :  { %v1094_v37 = vpop.f32.mrf.mxu1  ;;  %v1082_v51 = vpop.f32.mrf.mxu0 }
 0x1a9   :  { %v617_v39 = vpop.f32.mrf.mxu1  ;;  %v577_v53 = vpop.f32.mrf.mxu0 }
 0x1aa   :  { %816 = vxpose.xlu0.b32.cont [7/16] (narrow) %v617_v39, 8  ;;  %785 = vxpose.xlu1.b32.cont [8/16] (narrow) %v1070_v34, 8 }
 0x1ae   :  { %817 = vxpose.xlu0.b32.cont [8/16] (narrow) %v1094_v37, 8  ;;  %786 = vxpose.xlu1.b32.cont [9/16] (narrow) %v547_v40, 8 }
 0x1af   :  { %v1097_v41 = vpop.f32.mrf.mxu1 }
 0x1b1   :  { %v627_v43 = vpop.f32.mrf.mxu1 }
 0x1b2   :  { %818 = vxpose.xlu0.b32.cont [9/16] (narrow) %v627_v43, 8  ;;  %787 = vxpose.xlu1.b32.cont [10/16] (narrow) %v1073_v38, 8 }
 0x1b6   :  { %819 = vxpose.xlu0.b32.cont [10/16] (narrow) %v1097_v41, 8  ;;  %788 = vxpose.xlu1.b32.cont [11/16] (narrow) %v557_v44, 8 }
 0x1b7   :  { %v1100_v45 = vpop.f32.mrf.mxu1 }
 0x1b9   :  { %v637_v47 = vpop.f32.mrf.mxu1 }
 0x1ba   :  { %820 = vxpose.xlu0.b32.cont [11/16] (narrow) %v637_v47, 8  ;;  %789 = vxpose.xlu1.b32.cont [12/16] (narrow) %v1076_v42, 8 }
 0x1be   :  { %821 = vxpose.xlu0.b32.cont [12/16] (narrow) %v1100_v45, 8  ;;  %790 = vxpose.xlu1.b32.cont [13/16] (narrow) %v567_v48, 8 }
 0x1bf   :  { %v1103_v49 = vpop.f32.mrf.mxu1 }
 0x1c1   :  { %v647_v52 = vpop.f32.mrf.mxu1 }
 0x1c2   :  { %822 = vxpose.xlu0.b32.cont [13/16] (narrow) %v647_v52, 8  ;;  %791 = vxpose.xlu1.b32.cont [14/16] (narrow) %v1079_v46, 8 }
 0x1c6   :  { %823 = vxpose.xlu0.b32.cont [14/16] (narrow) %v1103_v49, 8  ;;  %792 = vxpose.xlu1.b32.cont [15/16] (narrow) %v577_v53, 8 }
 0x1c7   :  { %v1106_v54 = vpop.f32.mrf.mxu1 }
 0x1c9   :  { %v657_v55 = vpop.f32.mrf.mxu1 }
 0x1ca   :  { %824 = vxpose.xlu0.b32.cont [15/16] (narrow) %v657_v55, 8  ;;  %793 = vxpose.xlu1.b32.end [16/16] (narrow) %v1082_v51, 8 }
 0x1cb   :  { %v1109_v56 = vpop.f32.mrf.mxu1 }
 0x1cd   :  { %v667_v57 = vpop.f32.mrf.mxu1 }
 0x1ce   :  { %825 = vxpose.xlu0.b32.end [16/16] (narrow) %v1106_v54, 8  ;;  %842 = vxpose.xlu1.b32.start [1/16] (narrow) %v667_v57, 8  ;;  %v762_v8 = vpop.trf.xlu0 }
 0x1cf   :  { %v1112_v58 = vpop.f32.mrf.mxu1  ;;  %v880_v10 = vadd.f32 %v878_v7, %v762_v8 }
 0x1d1   :  { %v677_v59 = vpop.f32.mrf.mxu1  ;;  %1142 = vtanh.f32 %v880_v10 }
 0x1d2   :  { %843 = vxpose.xlu1.b32.cont [2/16] (narrow) %v1109_v56, 8 }
 0x1d3   :  { %v1115_v60 = vpop.f32.mrf.mxu1 }
 0x1d5   :  { %v687_v61 = vpop.f32.mrf.mxu1 }
 0x1d6   :  { %844 = vxpose.xlu1.b32.cont [3/16] (narrow) %v677_v59, 8 }
 0x1d7   :  { %v1118_v62 = vpop.f32.mrf.mxu1 }
 0x1d9   :  { %v697_v63 = vpop.f32.mrf.mxu1 }
 0x1da   :  { %845 = vxpose.xlu1.b32.cont [4/16] (narrow) %v1112_v58, 8 }
 0x1db   :  { %v1121_v0 = vpop.f32.mrf.mxu1 }
 0x1dd   :  { %v707_v1 = vpop.f32.mrf.mxu1 }
 0x1de   :  { %846 = vxpose.xlu1.b32.cont [5/16] (narrow) %v687_v61, 8  ;;  %v1143_v13 = vpop.eup %1142 }
 0x1df   :  { %v1124_v2 = vpop.f32.mrf.mxu1 }
 0x1e1   :  { %v717_v3 = vpop.f32.mrf.mxu1 }
 0x1e2   :  { %847 = vxpose.xlu1.b32.cont [6/16] (narrow) %v1115_v60, 8 }
 0x1e3   :  { %v1127_v4 = vpop.f32.mrf.mxu1 }
 0x1e5   :  { %v727_v5 = vpop.f32.mrf.mxu1 }
 0x1e6   :  { %848 = vxpose.xlu1.b32.cont [7/16] (narrow) %v697_v63, 8 }
 0x1e7   :  { %v1130_v6 = vpop.f32.mrf.mxu1 }
 0x1e9   :  { %v737_v9 = vpop.f32.mrf.mxu1 }
 0x1ea   :  { %849 = vxpose.xlu1.b32.cont [8/16] (narrow) %v1118_v62, 8 }
 0x1ee   :  { %850 = vxpose.xlu1.b32.cont [9/16] (narrow) %v707_v1, 8 }
 0x1f2   :  { %851 = vxpose.xlu1.b32.cont [10/16] (narrow) %v1121_v0, 8 }
 0x1f6   :  { %852 = vxpose.xlu1.b32.cont [11/16] (narrow) %v717_v3, 8 }
 0x1f7   :  { %1139 = vset.pattern.permute.xlu0 %v1175_v50 }
 0x1fa   :  { %853 = vxpose.xlu1.b32.cont [12/16] (narrow) %v1124_v2, 8 }
 0x1fe   :  { %854 = vxpose.xlu1.b32.cont [13/16] (narrow) %v727_v5, 8 }
 0x202   :  { %855 = vxpose.xlu1.b32.cont [14/16] (narrow) %v1127_v4, 8 }
 0x206   :  { %856 = vxpose.xlu1.b32.cont [15/16] (narrow) %v737_v9, 8 }
 0x20a   :  { %857 = vxpose.xlu1.b32.end [16/16] (narrow) %v1130_v6, 8  ;;  %v794_v11 = vpop.trf.xlu1 }
 0x20b   :  { %v881_v12 = vadd.f32 %v878_v7, %v794_v11 }
 0x20d   :  { %1144 = vtanh.f32 %v881_v12 }
 0x20e   :  { %v826_v50 = vpop.trf.xlu0 }
 0x20f   :  { %v882_v16 = vadd.f32 %v878_v7, %v826_v50 }
 0x211   :  { %1146 = vtanh.f32 %v882_v16 }
 0x21a   :  { %v1145_v14 = vpop.eup %1144 }
 0x21b   :  { %v892_v15 = vcombine.low %v1143_v13, %v1145_v14 }
 0x21d   :  { %896 = vst [vmem:[%s1284_s3] sm:$0x77] %v892_v15 }
 0x21e   :  { %v1147_v19 = vpop.eup %1146 }
 0x24a   :  { %v858_v17 = vpop.trf.xlu1 }
 0x24b   :  { %v883_v18 = vadd.f32 %v878_v7, %v858_v17 }
 0x24d   :  { %1148 = vtanh.f32 %v883_v18 }
 0x25a   :  { %v1149_v20 = vpop.eup %1148 }
 0x25b   :  { %v893_v21 = vcombine.low %v1147_v19, %v1149_v20 }
 0x25d   :  { %897 = vst [vmem:[%s1284_s3 + $0x8] sm:$0x77] %v893_v21 }
 0x25e   :  { %902 = vsyncpa [#allocation3], 1 }

</bundles_post_ra>
